<compile_context>
chip_gen: v7x
topology: tpu7x:2x2x1
jax: 0.10.0
libtpu: 0.0.40
codegen_flags: <defaults>
</compile_context>

<pallas_src>
from functools import partial
from itertools import product

import numpy as np
import jax
import jax.numpy as jnp
from jax.experimental import pallas as pl
from jax.experimental.pallas import tpu as pltpu


def _poly_expand_T(xT, exp):
    """Monomial expansion, feature-major (lane-dense) layout.

    xT  : (B, R)  inputs transposed (bit index on sublanes, batch index on lanes)
    exp : (M, B)  binary exponent table
    returns pT : (M, R) with pT[m, r] = prod_j xT[j, r] ** exp[m, j]

    For binary exponents e, x**e == 1 + e*(x - 1) exactly (and 0**0 == 1, matching
    torch.pow for these integer exponents), so the expansion is pure VPU mul/add.
    """
    B = xT.shape[0]
    xm1 = xT - 1.0                                     # (B, R), computed once per tile
    res = 1.0 + exp[:, 0:1] * xm1[0:1, :]              # (M, R)
    for j in range(1, B):                              # B is tiny; unrolled at trace time
        res = res * (1.0 + exp[:, j:j + 1] * xm1[j:j + 1, :])
    return res


def _weff_kernel(symT_ref, exp_ref, w_ref, weff_ref, *, M, max_amplitude):
    """restrict_energy == 1: fold the constellation normalization into the weight.

    Depends only on (exponent table, weight) -> runs once per weight, not per batch.
    The unique-symbol set equals the exponent-table rows by construction.
    """
    pT = _poly_expand_T(symT_ref[...], exp_ref[...])                        # (M, M)
    cT = jnp.dot(w_ref[...], pT, preferred_element_type=jnp.float32)       # (2, M)
    avg_power = jnp.sum(cT * cT, keepdims=True) / jnp.float32(M)           # (1, 1)
    if max_amplitude > 0:
        nf = jnp.sqrt((jnp.maximum(avg_power - max_amplitude, 0.0) + max_amplitude)
                      / max_amplitude)
    else:
        nf = jnp.sqrt(jnp.maximum(avg_power - 1.0, 0.0) + 1.0)
    weff_ref[...] = w_ref[...] / nf                                        # W_eff = W / nf


def _mod_kernel(xT_ref, exp_ref, w_ref, outT_ref):
    """Per-batch-tile modulation: out.T = W_eff @ poly(x).T (lane-dense)."""
    pT = _poly_expand_T(xT_ref[...], exp_ref[...])                          # (M, TN)
    outT_ref[...] = jnp.dot(w_ref[...], pT,
                            preferred_element_type=jnp.float32).astype(outT_ref.dtype)


def _mod_norm_symbols_kernel(xT_ref, exp_ref, w_ref, outT_ref, *, N):
    """restrict_energy == 2: normalization depends on the whole batch -> grid-less."""
    pT = _poly_expand_T(xT_ref[...], exp_ref[...])                          # (M, N)
    meansT = jnp.dot(w_ref[...], pT, preferred_element_type=jnp.float32)    # (2, N)
    avg_power = jnp.sqrt(jnp.sum(meansT * meansT, keepdims=True) / jnp.float32(N))
    norm = jnp.maximum(avg_power - 1.0, 0.0) + 1.0                          # (1, 1)
    outT_ref[...] = (meansT / norm).astype(outT_ref.dtype)


def poly_forward(x, exp_table, weight, *, restrict_energy=1, max_amplitude=0.0,
                 lane_tile=2048):
    """Poly.forward.

    x: (N, B) float32 inputs (bit vectors); exp_table: (M, B) binary exponent table
    (== the set of all unique symbols); weight: (2, M) = nn.Linear(2**B, 2).weight.
    """
    x = jnp.asarray(x, jnp.float32)
    exp_table = jnp.asarray(exp_table, jnp.float32)
    weight = jnp.asarray(weight, jnp.float32)

    N, B = x.shape
    M = exp_table.shape[0]
    xT = x.T                                   # (B, N): batch on lanes inside the kernel

    if restrict_energy == 3:
        # TODO(synk): center_and_normalize_constellation relies on self.center_means,
        # which is undefined in the reference module; not implemented.
        raise NotImplementedError("restrict_energy == 3 is not implemented")

    if restrict_energy == 2:
        # Batch-dependent normalization needs the full batch resident -> grid-less.
        outT = pl.pallas_call(
            partial(_mod_norm_symbols_kernel, N=N),
            out_shape=jax.ShapeDtypeStruct((2, N), jnp.float32),
            in_specs=[
                pl.BlockSpec((B, N), lambda: (0, 0)),
                pl.BlockSpec((M, B), lambda: (0, 0)),
                pl.BlockSpec((2, M), lambda: (0, 0)),
            ],
            out_specs=pl.BlockSpec((2, N), lambda: (0, 0)),
        )(xT, exp_table, weight)
        return outT.T

    if restrict_energy == 1:
        # One-shot tiny kernel: fold the constellation norm factor into the weight.
        expT = exp_table.T                     # (B, M): unique symbols, transposed
        w_eff = pl.pallas_call(
            partial(_weff_kernel, M=M, max_amplitude=float(max_amplitude)),
            out_shape=jax.ShapeDtypeStruct((2, M), jnp.float32),
            in_specs=[
                pl.BlockSpec((B, M), lambda: (0, 0)),   # unique symbols (transposed)
                pl.BlockSpec((M, B), lambda: (0, 0)),   # exponent table
                pl.BlockSpec((2, M), lambda: (0, 0)),   # weight
            ],
            out_specs=pl.BlockSpec((2, M), lambda: (0, 0)),
        )(expT, exp_table, weight)
    else:
        w_eff = weight                          # no energy restriction

    # Main modulation kernel, gridded ("parallel") over batch lanes.
    if N <= lane_tile:
        tn = N
    else:
        tn = max(128, (lane_tile // 128) * 128)   # lane tile must be a multiple of 128
    grid = (pl.cdiv(N, tn),)
    outT = pl.pallas_call(
        _mod_kernel,
        out_shape=jax.ShapeDtypeStruct((2, N), jnp.float32),
        grid=grid,
        in_specs=[
            pl.BlockSpec((B, tn), lambda i: (0, i)),    # x tile (transposed)
            pl.BlockSpec((M, B), lambda i: (0, 0)),     # exponent table (resident)
            pl.BlockSpec((2, M), lambda i: (0, 0)),     # effective weight (resident)
        ],
        out_specs=pl.BlockSpec((2, tn), lambda i: (0, i)),
        compiler_params=pltpu.CompilerParams(dimension_semantics=("parallel",)),
    )(xT, exp_table, w_eff)
    return outT.T                               # (N, 2), matching the module's output


def _reference_forward(x, exp_table, weight, restrict_energy=1, max_amplitude=0.0):
    """Pure-JAX reference mirroring the PyTorch module."""
    def poly(v):
        return jnp.prod(jnp.where(exp_table[None, :, :] > 0.5,
                                  v[:, None, :], 1.0), axis=2)

    means = poly(x) @ weight.T
    if restrict_energy == 1:
        c = poly(exp_table) @ weight.T          # all unique symbols == exp table rows
        avg_power = jnp.mean(jnp.sum(c ** 2, axis=-1))
        if max_amplitude > 0:
            nf = jnp.sqrt((jax.nn.relu(avg_power - max_amplitude) + max_amplitude)
                          / max_amplitude)
        else:
            nf = jnp.sqrt(jax.nn.relu(avg_power - 1.0) + 1.0)
        means = means / nf
    elif restrict_energy == 2:
        avg_power = jnp.sqrt(jnp.mean(jnp.sum(means ** 2, axis=1)))
        means = means / (jax.nn.relu(avg_power - 1.0) + 1.0)
    return means


if __name__ == "__main__":
    bits_per_symbol = 4
    M = 2 ** bits_per_symbol                    # 16

    key = jax.random.PRNGKey(0)
    k_x_small, k_x_big, k_w = jax.random.split(key, 3)

    # Exponent table == all binary tuples of length bits_per_symbol (== unique symbols).
    combos = np.array(list(product([0, 1], repeat=bits_per_symbol)), dtype=np.float32)
    exp_table = jnp.asarray(combos)             # (M, B)

    # nn.Linear(M, 2, bias=False) with uniform(-1/sqrt(M), 1/sqrt(M)) init.
    y = 1.0 / np.sqrt(M)
    weight = jax.random.uniform(k_w, (2, M), jnp.float32, minval=-y, maxval=y)

    # Small batch (like the torch module demo), a larger batch exercising the parallel
    # grid (2 tiles at the default lane_tile), and the three energy-restriction modes.
    cases = [(8, k_x_small, 1), (4096, k_x_big, 1), (8, k_x_small, 2), (8, k_x_small, 0)]
    for N, kx, re_mode in cases:
        x = jax.random.bernoulli(kx, 0.5, (N, bits_per_symbol)).astype(jnp.float32)
        out = jax.block_until_ready(
            poly_forward(x, exp_table, weight, restrict_energy=re_mode))
        ref = _reference_forward(x, exp_table, weight, restrict_energy=re_mode)
        np.testing.assert_allclose(np.asarray(out), np.asarray(ref),
                                   rtol=1e-5, atol=1e-5)
        assert out.shape == (N, 2)

    print("KERNEL_OK")
</pallas_src>

<mosaic_0001>
module attributes {stable_mosaic.version = 11 : i64} {
  func.func @_weff_kernel(%arg0: memref<4x16xf32, #tpu.memory_space<vmem>>, %arg1: memref<16x4xf32, #tpu.memory_space<vmem>>, %arg2: memref<2x16xf32, #tpu.memory_space<vmem>>, %arg3: memref<2x16xf32, #tpu.memory_space<vmem>>) attributes {dimension_semantics = [], scalar_prefetch = 0 : i64, scratch_operands = 0 : i64, tpu.core_type = #tpu.core_type<tc>} {
    %c0 = arith.constant 0 : index
    %c0_0 = arith.constant 0 : index
    %0 = vector.load %arg0[%c0, %c0_0] : memref<4x16xf32, #tpu.memory_space<vmem>>, vector<4x16xf32>
    %c0_1 = arith.constant 0 : index
    %c0_2 = arith.constant 0 : index
    %1 = vector.load %arg1[%c0_1, %c0_2] : memref<16x4xf32, #tpu.memory_space<vmem>>, vector<16x4xf32>
    %cst = arith.constant 1.000000e+00 : f32
    %2 = vector.broadcast %cst : f32 to vector<4x16xf32>
    %3 = arith.subf %0, %2 : vector<4x16xf32>
    %4 = vector.extract_strided_slice %1 {offsets = [0, 0], sizes = [16, 1], strides = [1, 1]} : vector<16x4xf32> to vector<16x1xf32>
    %5 = vector.extract_strided_slice %3 {offsets = [0, 0], sizes = [1, 16], strides = [1, 1]} : vector<4x16xf32> to vector<1x16xf32>
    %6 = vector.broadcast %4 : vector<16x1xf32> to vector<16x16xf32>
    %7 = vector.broadcast %5 : vector<1x16xf32> to vector<16x16xf32>
    %8 = arith.mulf %6, %7 : vector<16x16xf32>
    %cst_3 = arith.constant 1.000000e+00 : f32
    %9 = vector.broadcast %cst_3 : f32 to vector<16x16xf32>
    %10 = arith.addf %9, %8 : vector<16x16xf32>
    %11 = vector.extract_strided_slice %1 {offsets = [0, 1], sizes = [16, 1], strides = [1, 1]} : vector<16x4xf32> to vector<16x1xf32>
    %12 = vector.extract_strided_slice %3 {offsets = [1, 0], sizes = [1, 16], strides = [1, 1]} : vector<4x16xf32> to vector<1x16xf32>
    %13 = vector.broadcast %11 : vector<16x1xf32> to vector<16x16xf32>
    %14 = vector.broadcast %12 : vector<1x16xf32> to vector<16x16xf32>
    %15 = arith.mulf %13, %14 : vector<16x16xf32>
    %cst_4 = arith.constant 1.000000e+00 : f32
    %16 = vector.broadcast %cst_4 : f32 to vector<16x16xf32>
    %17 = arith.addf %16, %15 : vector<16x16xf32>
    %18 = arith.mulf %10, %17 : vector<16x16xf32>
    %19 = vector.extract_strided_slice %1 {offsets = [0, 2], sizes = [16, 1], strides = [1, 1]} : vector<16x4xf32> to vector<16x1xf32>
    %20 = vector.extract_strided_slice %3 {offsets = [2, 0], sizes = [1, 16], strides = [1, 1]} : vector<4x16xf32> to vector<1x16xf32>
    %21 = vector.broadcast %19 : vector<16x1xf32> to vector<16x16xf32>
    %22 = vector.broadcast %20 : vector<1x16xf32> to vector<16x16xf32>
    %23 = arith.mulf %21, %22 : vector<16x16xf32>
    %cst_5 = arith.constant 1.000000e+00 : f32
    %24 = vector.broadcast %cst_5 : f32 to vector<16x16xf32>
    %25 = arith.addf %24, %23 : vector<16x16xf32>
    %26 = arith.mulf %18, %25 : vector<16x16xf32>
    %27 = vector.extract_strided_slice %1 {offsets = [0, 3], sizes = [16, 1], strides = [1, 1]} : vector<16x4xf32> to vector<16x1xf32>
    %28 = vector.extract_strided_slice %3 {offsets = [3, 0], sizes = [1, 16], strides = [1, 1]} : vector<4x16xf32> to vector<1x16xf32>
    %29 = vector.broadcast %27 : vector<16x1xf32> to vector<16x16xf32>
    %30 = vector.broadcast %28 : vector<1x16xf32> to vector<16x16xf32>
    %31 = arith.mulf %29, %30 : vector<16x16xf32>
    %cst_6 = arith.constant 1.000000e+00 : f32
    %32 = vector.broadcast %cst_6 : f32 to vector<16x16xf32>
    %33 = arith.addf %32, %31 : vector<16x16xf32>
    %34 = arith.mulf %26, %33 : vector<16x16xf32>
    %c0_7 = arith.constant 0 : index
    %c0_8 = arith.constant 0 : index
    %35 = vector.load %arg2[%c0_7, %c0_8] : memref<2x16xf32, #tpu.memory_space<vmem>>, vector<2x16xf32>
    %cst_9 = arith.constant dense<0.000000e+00> : vector<2x16xf32>
    %36 = tpu.matmul %35, %34, %cst_9 {dimension_numbers = #tpu.dot_dimension_numbers<[1], [0], [0], [1], [0, 0, 1, 1], [], []>} : vector<2x16xf32>, vector<16x16xf32>, vector<2x16xf32> -> vector<2x16xf32>
    %37 = arith.mulf %36, %36 : vector<2x16xf32>
    %38 = vector.shape_cast %37 : vector<2x16xf32> to vector<1x2x16xf32>
    %cst_10 = arith.constant dense<0.000000e+00> : vector<1xf32>
    %39 = vector.multi_reduction <add>, %38, %cst_10 [1, 2] : vector<1x2x16xf32> to vector<1xf32>
    %40 = vector.shape_cast %39 : vector<1xf32> to vector<1x1x1xf32>
    %41 = vector.extract %40[0, 0, 0] : f32 from vector<1x1x1xf32>
    %42 = vector.broadcast %41 : f32 to vector<1x1xf32>
    %cst_11 = arith.constant 1.600000e+01 : f32
    %43 = vector.broadcast %cst_11 : f32 to vector<1x1xf32>
    %44 = arith.divf %42, %43 : vector<1x1xf32>
    %cst_12 = arith.constant 1.000000e+00 : f32
    %45 = vector.broadcast %cst_12 : f32 to vector<1x1xf32>
    %46 = arith.subf %44, %45 : vector<1x1xf32>
    %cst_13 = arith.constant 0.000000e+00 : f32
    %47 = vector.broadcast %cst_13 : f32 to vector<1x1xf32>
    %48 = arith.maximumf %46, %47 : vector<1x1xf32>
    %cst_14 = arith.constant 1.000000e+00 : f32
    %49 = vector.broadcast %cst_14 : f32 to vector<1x1xf32>
    %50 = arith.addf %48, %49 : vector<1x1xf32>
    %51 = math.sqrt %50 : vector<1x1xf32>
    %c0_15 = arith.constant 0 : index
    %c0_16 = arith.constant 0 : index
    %52 = vector.load %arg2[%c0_15, %c0_16] : memref<2x16xf32, #tpu.memory_space<vmem>>, vector<2x16xf32>
    %53 = vector.broadcast %51 : vector<1x1xf32> to vector<2x16xf32>
    %54 = arith.divf %52, %53 : vector<2x16xf32>
    %c0_17 = arith.constant 0 : index
    %c0_18 = arith.constant 0 : index
    %55 = vector.load %arg3[%c0_17, %c0_18] : memref<2x16xf32, #tpu.memory_space<vmem>>, vector<2x16xf32>
    tpu.vector_store %arg3[%c0_17, %c0_18], %54 {strides = array<i32>} : memref<2x16xf32, #tpu.memory_space<vmem>>, vector<2x16xf32>,
    return
  }
}

</mosaic_0001>

<bundles_post_ra>
// kernel: tpu_custom_call.1
= control target key start
LH: loop header
LB: loop body
LE: loop exit
PB: predicated region body
PF: predicated region fallthrough
CT: control target
= control target key end

     0   :  { %v268_v1 = vmov 1   ;;  %v269_v2 = vmov 0   ;;  %s322_s0 = inlined_call_operand.vmem [shape: f32[4,16], index: 0, kind: input, shape index: {}]   ;;  %s323_s1 = inlined_call_operand.vmem [shape: f32[16,4], index: 1, kind: input, shape index: {}]   ;;  %s324_s2 = inlined_call_operand.vmem [shape: f32[2,16], index: 2, kind: input, shape index: {}]   ;;  %s325_s3 = inlined_call_operand.hbm [shape: f32[2,16], index: 3, kind: output, shape index: {}]  }
   0x1   :  { %v16_v0 = vld [vmem:[%s323_s1] sm:$0xff]  ;;  %235 = vset.pattern.permute.xlu1 %v268_v1  ;;  %234 = vset.pattern.permute.xlu0 %v269_v2 }
   0x2   :  { %8 = vsyncpa [#allocation3], 0  ;;  %38 = vperm.xlu1 %235, %v16_v0   ;;  %21 = vperm.xlu0 %234, %v16_v0   ;;  %v17_v3 = vld [vmem:[%s323_s1 + $0x8] sm:$0xff]  ;;  %v270_v4 = vmov 2   ;;  %v271_v5 = vmov 3   ;;  %v272_v6 = vmov 0.0|0.0   ;;  %v29_v8 = vlaneseq }
   0x3   :  { %221 = vmatprep.subr.bf16.mxu0 %v272_v6  ;;  %vm273_vm0 = vmmov 0   ;;  %v274_v7 = vmov 0.0   ;;  %v15_v10 = vld [vmem:[%s322_s0] sm:$0xf]  ;;  %vm92_vm1 = vcmask 130048   ;;  %vm167_vm2 = vcmask 123904  }
   0x4   :  { %218 = vmatprep.mubr.msk.f32.mxu0 %vm273_vm0, %v274_v7  ;;  %v30_v9 = vshrl.u32 %v29_v8, 7  ;;  %v208_v12 = vadd.f32 -1.0, %v15_v10  ;;  %v91_v51 = vld [vmem:[%s324_s2] sm:$0x3]  ;;  %s275_s2 = smov [#allocation2]  }
   0x5   :  { %s200_s19 = sshll.u32 %s275_s2, 4  ;;  %s201_s19 = int_to_ptr.vmem [resolvable:$true] %s200_s19 }
   0x6   :  { %42 = vperm.xlu1 %235, %v17_v3   ;;  %26 = vperm.xlu0 %234, %v17_v3   ;;  %v47_v11 = vsub.s32 1, %v30_v9  ;;  %v31_v13 = vsub.s32 0, %v30_v9  ;;  %v65_v16 = vsub.s32 2, %v30_v9  ;;  %v83_v22 = vsub.s32 3, %v30_v9  ;;  %s244_s20 = scalar_lea.vmem %s201_s19, 32  ;;  %p249_p1 = scmp.lt.s32.totalorder %s201_s19, %s201_s19 }
   0x7   :  { %p245_p0 = scmp.ne.s32.totalorder %s201_s19, %s244_s20  ;;  %p250_p2 = scmp.lt.s32.totalorder %s244_s20, %s244_s20 }
   0x8   :  { %v48_v17 = vrot.slane %v208_v12, %v47_v11  ;;  %v32_v18 = vrot.slane %v208_v12, %v31_v13  ;;  %v66_v21 = vrot.slane %v208_v12, %v65_v16  ;;  %v84_v31 = vrot.slane %v208_v12, %v83_v22 }
   0x9   :  { %p251_p3 = por %p250_p2, %p249_p1 }
   0xa   :  { %237 = vset.pattern.permute.xlu1 %v270_v4  ;;  %236 = vset.pattern.permute.xlu0 %v270_v4 }
   0xb   :  { %60 = vperm.xlu1 %237, %v17_v3   ;;  %56 = vperm.xlu0 %236, %v16_v0   ;;  %p252_p4 = pnand %p251_p3, %p245_p0 }
   0xf   :  { %238 = vset.pattern.permute.xlu1 %v271_v5  ;;  %239 = vset.pattern.permute.xlu0 %v271_v5 }
  0x10   :  { %74 = vperm.xlu1 %238, %v16_v0   ;;  %78 = vperm.xlu0 %239, %v17_v3  }
  0x81   :  { %v39_v14 = vpop.permute.xlu1 %38  ;;  %v22_v15 = vpop.permute.xlu0 %21 }
  0x82   :  { %v49_v23 = vmul.f32 %v48_v17, %v39_v14  ;;  %v33_v24 = vmul.f32 %v32_v18, %v22_v15 }
  0x84   :  { %v51_v32 = vadd.f32 1.0, %v49_v23  ;;  %v35_v33 = vadd.f32 1.0, %v33_v24 }
  0x85   :  { %v43_v19 = vpop.permute.xlu1 %42  ;;  %v27_v20 = vpop.permute.xlu0 %26 }
  0x86   :  { %v50_v25 = vmul.f32 %v48_v17, %v43_v19  ;;  %v34_v26 = vmul.f32 %v32_v18, %v27_v20  ;;  %v53_v40 = vmul.f32 %v51_v32, %v35_v33 }
  0x88   :  { %v52_v34 = vadd.f32 1.0, %v50_v25  ;;  %v36_v35 = vadd.f32 1.0, %v34_v26 }
  0x8a   :  { %v61_v27 = vpop.permute.xlu1 %60  ;;  %v57_v28 = vpop.permute.xlu0 %56  ;;  %v54_v41 = vmul.f32 %v52_v34, %v36_v35 }
  0x8b   :  { %v68_v29 = vmul.f32 %v66_v21, %v61_v27  ;;  %v67_v30 = vmul.f32 %v66_v21, %v57_v28 }
  0x8d   :  { %v70_v36 = vadd.f32 1.0, %v68_v29  ;;  %v69_v37 = vadd.f32 1.0, %v67_v30 }
  0x8f   :  { %v75_v38 = vpop.permute.xlu1 %74  ;;  %v79_v39 = vpop.permute.xlu0 %78  ;;  %v72_v44 = vmul.f32 %v70_v36, %v54_v41  ;;  %v71_v45 = vmul.f32 %v69_v37, %v53_v40 }
  0x90   :  { %v85_v42 = vmul.f32 %v84_v31, %v75_v38  ;;  %v86_v43 = vmul.f32 %v84_v31, %v79_v39 }
  0x92   :  { %v87_v46 = vadd.f32 1.0, %v85_v42  ;;  %v88_v47 = vadd.f32 1.0, %v86_v43 }
  0x94   :  { %v89_v48 = vmul.f32 %v87_v46, %v71_v45  ;;  %v90_v49 = vmul.f32 %v88_v47, %v72_v44 }
  0x96   :  { %v222_v50 = vpack.c.bf16 %v90_v49, %v89_v48 }
  0x98   :  { %223 = vmatpush3.bf16.msra.mxu0 %v222_v50 }
  0x9b   :  { %219 = vmatmul.mubr.msk.f32.vlgmr.msra.gmra.mrb[0].mxu0 %vm92_vm1, %v91_v51 }
 0x16e   :  { %v162_v52 = vpop.f32.mrb[0].mxu0 }
 0x16f   :  { %v166_v53 = vmul.f32 %v162_v52, %v162_v52  ;;  %v220_v54 = vpop.f32.mrb[1].mxu0 }
 0x171   :  { %v168_v55 = vsel %vm167_vm2, %v166_v53, 0.0 }
 0x172   :  { %169 = vadd.xlane.f32.xlu1 %v168_v55 }
 0x1ff   :  { %v170_v56 = vpop.xlane.xlu1 %169 }
 0x200   :  { %v171_v57 = vrot.slane %v170_v56, 4 }
 0x202   :  { %v172_v58 = vadd.f32 %v171_v57, %v170_v56 }
 0x204   :  { %v173_v59 = vrot.slane %v172_v58, 2 }
 0x206   :  { %v174_v60 = vadd.f32 %v173_v59, %v172_v58 }
 0x208   :  { %v175_v61 = vrot.slane %v174_v60, 1 }
 0x20a   :  { %v176_v62 = vadd.f32 %v175_v61, %v174_v60 }
 0x20c   :  { %224 = vpush %v176_v62 }
 0x23d   :  { %s225_s18 = spop %224 }
 0x23e   :  { %v178_v63 = vstv %s225_s18 }
 0x23f   :  { %v180_v0 = vmul.f32 0.0625, %v178_v63 }
 0x241   :  { %v210_v1 = vadd.f32 -1.0, %v180_v0 }
 0x243   :  { %v182_v2 = vmax.f32 %v210_v1, 0.0 }
 0x245   :  { %v183_v3 = vadd.f32 1.0, %v182_v2 }
 0x247   :  { %240 = vrsqrt.f32 %v183_v3  ;;  %vm186_vm3 = vcmp.eq.f32.partialorder %v183_v3, inf  ;;  %v189_v6 = vand.u32 2147483648, %v183_v3  ;;  %vm188_vm4 = vcmp.eq.f32.partialorder %v183_v3, 0.0 }
 0x251   :  { %v241_v4 = vpop.eup %240 }
 0x252   :  { %v185_v5 = vmul.f32 %v241_v4, %v183_v3 }
 0x254   :  { %v187_v7 = vsel %vm186_vm3, %v183_v3, %v185_v5 }
 0x255   :  { %v190_v8 = vsel %vm188_vm4, %v189_v6, %v187_v7 }
 0x256   :  { %242 = vrcp.f32 %v190_v8 }
 0x260   :  { %v243_v9 = vpop.eup %242 }
 0x261   :  { %v192_v10 = vmul.f32 %v243_v9, %v91_v51 }
 0x263   :  { %193 = vst.msk [vmem:[#allocation2] sm:$0x3] %vm167_vm2, %v192_v10 }
 0x264   :  { %255 = shalt.err (!%p252_p4)
}
 0x265   :  { %s256_s23 = scalar_lea.hbm %s325_s3, 32 }
 0x266   :  { %p257_p5 = scmp.ne.s32.totalorder %s325_s3, %s256_s23  ;;  %p260_p6 = scmp.lt.u32.totalorder %s256_s23, %s325_s3 }
 0x268   :  { %p262_p7 = pnand %p260_p6, %p257_p5 }
 0x26a   :  { %265 = shalt.err (!%p262_p7)
}
 0x26b   :  { %203 = dma.vmem_to_hbm [thread:$0]  %s201_s19, 32, %s325_s3, [#allocation3]  }
 0x26c   :  { %266 = dma.done.wait [#allocation3], 32  }
 0x26d   :  { %267 = vsyncadd [#allocation3], 4294967264 }
 0x26e   :  { %207 = vsyncpa [#allocation3], 1 }

</bundles_post_ra>
